<compile_context>
chip_gen: v7x
topology: tpu7x:2x2x1
jax: 0.10.0
libtpu: 0.0.40
codegen_flags: <defaults>
</compile_context>

<pallas_src>
import jax
import jax.numpy as jnp
from jax.experimental import pallas as pl
from jax.experimental.pallas import tpu as pltpu

LEN_MFCC = 16                      # small synthetic MFCC window size
IN_F = LEN_MFCC * LEN_MFCC         # 256  (already a multiple of 128)
H1, H2, OUT = 100, 50, 1           # logical feature widths (as in the PyTorch module)
H1P, H2P, OUT_P = 128, 128, 128    # lane-padded widths
BT_MAX = 2048                      # batch-tile rows (bf16 x tile = 1 MiB / buffer)


def simplenet_kernel(x_ref, w1_ref, b1_ref, w2_ref, b2_ref, w3_ref, b3_ref, o_ref):
    # x tile streams per grid step; weights / biases are grid-resident blocks.
    x = x_ref[...]                                                        # (BT, IN_F) bf16

    # fc1 + ReLU  (bf16 MXU inputs, f32 accumulate / elementwise)
    h1 = jnp.dot(x, w1_ref[...], preferred_element_type=jnp.float32) + b1_ref[...]
    h1 = jnp.maximum(h1, 0.0)                                             # (BT, 128) f32

    # fc2 + ReLU  (f32; zero-padded rows/cols of w2 keep this exact)
    h2 = jnp.dot(h1, w2_ref[...], preferred_element_type=jnp.float32) + b2_ref[...]
    h2 = jnp.maximum(h2, 0.0)                                             # (BT, 128) f32

    # fc3 (N=1): VPU multiply + cross-lane reduce, no 1-lane MXU matmul.
    z = jnp.sum(h2 * w3_ref[...], axis=-1, keepdims=True) + b3_ref[:, :1]  # (BT, 1)
    sig = jax.nn.sigmoid(z)                                               # stable sigmoid

    # Lane-dense store: replicate across the 128-wide output block (unmasked vst).
    o_ref[...] = jnp.broadcast_to(sig, o_ref.shape)


def simplenet_forward(x, params, *, bt_max=BT_MAX):
    """x: any shape whose trailing dims flatten to IN_F per row (NCHW ok)."""
    w1, b1, w2, b2, w3, b3 = params
    x2d = x.reshape(-1, IN_F)                                             # view(-1, len_mfcc^2)
    B = x2d.shape[0]

    # Batch tile: multiple of 16 sublanes (bf16 packing), capped at bt_max.
    BT = min(bt_max, ((B + 15) // 16) * 16)
    B_pad = pl.cdiv(B, BT) * BT
    x2d = jnp.pad(x2d, ((0, B_pad - B), (0, 0))).astype(jnp.bfloat16)

    # Zero-pad feature dims to lane width; exact through ReLU / final reduce.
    w1p = jnp.pad(w1, ((0, 0), (0, H1P - H1))).astype(jnp.bfloat16)             # (256, 128)
    b1p = jnp.pad(b1, ((0, 0), (0, H1P - H1))).astype(jnp.float32)              # (1, 128)
    w2p = jnp.pad(w2, ((0, H1P - H1), (0, H2P - H2))).astype(jnp.float32)       # (128, 128)
    b2p = jnp.pad(b2, ((0, 0), (0, H2P - H2))).astype(jnp.float32)              # (1, 128)
    w3p = jnp.pad(w3.reshape(1, H2), ((0, 0), (0, H2P - H2))).astype(jnp.float32)  # (1, 128)
    b3p = jnp.broadcast_to(b3.reshape(1, 1), (1, OUT_P)).astype(jnp.float32)       # (1, 128)

    cost = pl.CostEstimate(
        flops=2 * B_pad * (IN_F * H1P + H1P * H2P + H2P),
        transcendentals=B_pad,
        bytes_accessed=(x2d.size * 2 + w1p.size * 2
                        + (b1p.size + w2p.size + b2p.size + w3p.size + b3p.size) * 4
                        + B_pad * OUT_P * 4),
    )

    out = pl.pallas_call(
        simplenet_kernel,
        out_shape=jax.ShapeDtypeStruct((B_pad, OUT_P), jnp.float32),
        grid=(B_pad // BT,),
        in_specs=[
            pl.BlockSpec((BT, IN_F), lambda i: (i, 0)),       # x: streamed per batch tile
            pl.BlockSpec((IN_F, H1P), lambda i: (0, 0)),      # w1: resident across grid
            pl.BlockSpec((1, H1P), lambda i: (0, 0)),         # b1
            pl.BlockSpec((H1P, H2P), lambda i: (0, 0)),       # w2
            pl.BlockSpec((1, H2P), lambda i: (0, 0)),         # b2
            pl.BlockSpec((1, H2P), lambda i: (0, 0)),         # w3 row
            pl.BlockSpec((1, OUT_P), lambda i: (0, 0)),       # b3 (broadcast row)
        ],
        out_specs=pl.BlockSpec((BT, OUT_P), lambda i: (i, 0)),
        compiler_params=pltpu.CompilerParams(
            dimension_semantics=("parallel",),
            vmem_limit_bytes=32 * 1024 * 1024,
        ),
        cost_estimate=cost,
    )(x2d, w1p, b1p, w2p, b2p, w3p, b3p)

    return out[:B, :OUT]


def init_params(key):
    """Deterministic init mirroring torch.nn.Linear default: U(-1/sqrt(fan_in), +)."""
    ks = jax.random.split(key, 6)

    def linear(kw, kb, fan_in, fan_out):
        bound = 1.0 / jnp.sqrt(jnp.float32(fan_in))
        w = jax.random.uniform(kw, (fan_in, fan_out), jnp.float32, -bound, bound)
        b = jax.random.uniform(kb, (1, fan_out), jnp.float32, -bound, bound)
        return w, b

    w1, b1 = linear(ks[0], ks[1], IN_F, H1)
    w2, b2 = linear(ks[2], ks[3], H1, H2)
    w3, b3 = linear(ks[4], ks[5], H2, OUT)
    return (w1, b1, w2, b2, w3, b3)


def reference_forward(x, params):
    """Pure-JAX reference using the same bf16 fc1 input precision as the kernel."""
    w1, b1, w2, b2, w3, b3 = params
    h = x.reshape(-1, IN_F)
    h = jnp.dot(h.astype(jnp.bfloat16), w1.astype(jnp.bfloat16),
                preferred_element_type=jnp.float32) + b1
    h = jnp.maximum(h, 0.0)
    h = jnp.maximum(jnp.dot(h, w2, preferred_element_type=jnp.float32) + b2, 0.0)
    return jax.nn.sigmoid(jnp.dot(h, w3, preferred_element_type=jnp.float32) + b3)


if __name__ == "__main__":
    key = jax.random.PRNGKey(0)
    k_x, k_p = jax.random.split(key)

    # NCHW-style input, flattened per-row to len_mfcc*len_mfcc features.
    x = jax.random.normal(k_x, (2, 1, LEN_MFCC, LEN_MFCC), dtype=jnp.float32)
    params = init_params(k_p)

    out = simplenet_forward(x, params)
    out = jax.block_until_ready(out)

    ref = reference_forward(x, params)
    assert out.shape == (2, 1), out.shape
    assert jnp.allclose(out, ref, atol=1e-4, rtol=1e-4), "mismatch vs pure-JAX reference"

    print("KERNEL_OK")
</pallas_src>

<mosaic_0001>
module attributes {stable_mosaic.version = 11 : i64} {
  func.func @simplenet_kernel(%arg0: i32, %arg1: memref<16x256xbf16, #tpu.memory_space<vmem>>, %arg2: memref<256x128xbf16, #tpu.memory_space<vmem>>, %arg3: memref<1x128xf32, #tpu.memory_space<vmem>>, %arg4: memref<128x128xf32, #tpu.memory_space<vmem>>, %arg5: memref<1x128xf32, #tpu.memory_space<vmem>>, %arg6: memref<1x128xf32, #tpu.memory_space<vmem>>, %arg7: memref<1x128xf32, #tpu.memory_space<vmem>>, %arg8: memref<16x128xf32, #tpu.memory_space<vmem>>) attributes {dimension_semantics = [#tpu.dimension_semantics<parallel>], iteration_bounds = array<i64: 1>, scalar_prefetch = 0 : i64, scratch_operands = 0 : i64, tpu.core_type = #tpu.core_type<tc>, window_params = [{transform_indices = @transform_0, window_bounds = array<i64: 16, 256>}, {pipeline_mode = #tpu.pipeline_mode<synchronous>, transform_indices = @transform_1, window_bounds = array<i64: 256, 128>}, {pipeline_mode = #tpu.pipeline_mode<synchronous>, transform_indices = @transform_2, window_bounds = array<i64: 1, 128>}, {pipeline_mode = #tpu.pipeline_mode<synchronous>, transform_indices = @transform_3, window_bounds = array<i64: 128, 128>}, {pipeline_mode = #tpu.pipeline_mode<synchronous>, transform_indices = @transform_4, window_bounds = array<i64: 1, 128>}, {pipeline_mode = #tpu.pipeline_mode<synchronous>, transform_indices = @transform_5, window_bounds = array<i64: 1, 128>}, {pipeline_mode = #tpu.pipeline_mode<synchronous>, transform_indices = @transform_6, window_bounds = array<i64: 1, 128>}, {transform_indices = @transform_7, window_bounds = array<i64: 16, 128>}]} {
    %c0 = arith.constant 0 : index
    %c0_0 = arith.constant 0 : index
    %0 = vector.load %arg1[%c0, %c0_0] : memref<16x256xbf16, #tpu.memory_space<vmem>>, vector<16x256xbf16>
    %c0_1 = arith.constant 0 : index
    %c0_2 = arith.constant 0 : index
    %1 = vector.load %arg2[%c0_1, %c0_2] : memref<256x128xbf16, #tpu.memory_space<vmem>>, vector<256x128xbf16>
    %cst = arith.constant dense<0.000000e+00> : vector<16x128xf32>
    %2 = tpu.matmul %0, %1, %cst {dimension_numbers = #tpu.dot_dimension_numbers<[1], [0], [0], [1], [0, 0, 1, 1], [], []>} : vector<16x256xbf16>, vector<256x128xbf16>, vector<16x128xf32> -> vector<16x128xf32>
    %c0_3 = arith.constant 0 : index
    %c0_4 = arith.constant 0 : index
    %3 = vector.load %arg3[%c0_3, %c0_4] : memref<1x128xf32, #tpu.memory_space<vmem>>, vector<1x128xf32>
    %4 = vector.broadcast %3 : vector<1x128xf32> to vector<16x128xf32>
    %5 = arith.addf %2, %4 : vector<16x128xf32>
    %cst_5 = arith.constant 0.000000e+00 : f32
    %6 = vector.broadcast %cst_5 : f32 to vector<16x128xf32>
    %7 = arith.maximumf %5, %6 : vector<16x128xf32>
    %c0_6 = arith.constant 0 : index
    %c0_7 = arith.constant 0 : index
    %8 = vector.load %arg4[%c0_6, %c0_7] : memref<128x128xf32, #tpu.memory_space<vmem>>, vector<128x128xf32>
    %cst_8 = arith.constant dense<0.000000e+00> : vector<16x128xf32>
    %9 = tpu.matmul %7, %8, %cst_8 {dimension_numbers = #tpu.dot_dimension_numbers<[1], [0], [0], [1], [0, 0, 1, 1], [], []>} : vector<16x128xf32>, vector<128x128xf32>, vector<16x128xf32> -> vector<16x128xf32>
    %c0_9 = arith.constant 0 : index
    %c0_10 = arith.constant 0 : index
    %10 = vector.load %arg5[%c0_9, %c0_10] : memref<1x128xf32, #tpu.memory_space<vmem>>, vector<1x128xf32>
    %11 = vector.broadcast %10 : vector<1x128xf32> to vector<16x128xf32>
    %12 = arith.addf %9, %11 : vector<16x128xf32>
    %cst_11 = arith.constant 0.000000e+00 : f32
    %13 = vector.broadcast %cst_11 : f32 to vector<16x128xf32>
    %14 = arith.maximumf %12, %13 : vector<16x128xf32>
    %c0_12 = arith.constant 0 : index
    %c0_13 = arith.constant 0 : index
    %15 = vector.load %arg6[%c0_12, %c0_13] : memref<1x128xf32, #tpu.memory_space<vmem>>, vector<1x128xf32>
    %16 = vector.broadcast %15 : vector<1x128xf32> to vector<16x128xf32>
    %17 = arith.mulf %14, %16 : vector<16x128xf32>
    %cst_14 = arith.constant dense<0.000000e+00> : vector<16xf32>
    %18 = vector.multi_reduction <add>, %17, %cst_14 [1] : vector<16x128xf32> to vector<16xf32>
    %19 = vector.shape_cast %18 : vector<16xf32> to vector<16x1xf32>
    %c0_15 = arith.constant 0 : index
    %c0_16 = arith.constant 0 : index
    %20 = vector.load %arg7[%c0_15, %c0_16] : memref<1x128xf32, #tpu.memory_space<vmem>>, vector<1x1xf32>
    %21 = vector.broadcast %20 : vector<1x1xf32> to vector<16x1xf32>
    %22 = arith.addf %19, %21 : vector<16x1xf32>
    %23 = arith.negf %22 : vector<16x1xf32>
    %24 = math.exp %23 : vector<16x1xf32>
    %cst_17 = arith.constant 1.000000e+00 : f32
    %25 = vector.broadcast %cst_17 : f32 to vector<16x1xf32>
    %26 = arith.addf %25, %24 : vector<16x1xf32>
    %27 = arith.divf %25, %26 : vector<16x1xf32>
    %28 = vector.shape_cast %27 : vector<16x1xf32> to vector<16x1xf32>
    %29 = vector.broadcast %28 : vector<16x1xf32> to vector<16x128xf32>
    %c0_18 = arith.constant 0 : index
    %c0_19 = arith.constant 0 : index
    %30 = vector.load %arg8[%c0_18, %c0_19] : memref<16x128xf32, #tpu.memory_space<vmem>>, vector<16x128xf32>
    tpu.vector_store %arg8[%c0_18, %c0_19], %29 {strides = array<i32>} : memref<16x128xf32, #tpu.memory_space<vmem>>, vector<16x128xf32>,
    return
  }
  func.func @transform_0(%arg0: i32) -> (i32, i32) {
    %c0_i32 = arith.constant 0 : i32
    %c0_i32_0 = arith.constant 0 : i32
    return %arg0, %c0_i32 : i32, i32
  }
  func.func @transform_1(%arg0: i32) -> (i32, i32) {
    %c0_i32 = arith.constant 0 : i32
    %c0_i32_0 = arith.constant 0 : i32
    %c0_i32_1 = arith.constant 0 : i32
    return %c0_i32, %c0_i32_0 : i32, i32
  }
  func.func @transform_2(%arg0: i32) -> (i32, i32) {
    %c0_i32 = arith.constant 0 : i32
    %c0_i32_0 = arith.constant 0 : i32
    %c0_i32_1 = arith.constant 0 : i32
    return %c0_i32, %c0_i32_0 : i32, i32
  }
  func.func @transform_3(%arg0: i32) -> (i32, i32) {
    %c0_i32 = arith.constant 0 : i32
    %c0_i32_0 = arith.constant 0 : i32
    %c0_i32_1 = arith.constant 0 : i32
    return %c0_i32, %c0_i32_0 : i32, i32
  }
  func.func @transform_4(%arg0: i32) -> (i32, i32) {
    %c0_i32 = arith.constant 0 : i32
    %c0_i32_0 = arith.constant 0 : i32
    %c0_i32_1 = arith.constant 0 : i32
    return %c0_i32, %c0_i32_0 : i32, i32
  }
  func.func @transform_5(%arg0: i32) -> (i32, i32) {
    %c0_i32 = arith.constant 0 : i32
    %c0_i32_0 = arith.constant 0 : i32
    %c0_i32_1 = arith.constant 0 : i32
    return %c0_i32, %c0_i32_0 : i32, i32
  }
  func.func @transform_6(%arg0: i32) -> (i32, i32) {
    %c0_i32 = arith.constant 0 : i32
    %c0_i32_0 = arith.constant 0 : i32
    %c0_i32_1 = arith.constant 0 : i32
    return %c0_i32, %c0_i32_0 : i32, i32
  }
  func.func @transform_7(%arg0: i32) -> (i32, i32) {
    %c0_i32 = arith.constant 0 : i32
    %c0_i32_0 = arith.constant 0 : i32
    return %arg0, %c0_i32 : i32, i32
  }
}

</mosaic_0001>

<bundles_post_ra>
// kernel: tpu_custom_call.1
= control target key start
LH: loop header
LB: loop body
LE: loop exit
PB: predicated region body
PF: predicated region fallthrough
CT: control target
= control target key end

     0   :  { %12 = vsyncpa [#allocation3], 0  ;;  %s804_s0 = inlined_call_operand.hbm [shape: bf16[16,256], index: 0, kind: input, shape index: {}]   ;;  %s805_s1 = inlined_call_operand.hbm [shape: bf16[256,128], index: 1, kind: input, shape index: {}]   ;;  %s806_s2 = inlined_call_operand.vmem [shape: f32[1,128], index: 2, kind: input, shape index: {}]   ;;  %s807_s3 = inlined_call_operand.hbm [shape: f32[128,128], index: 3, kind: input, shape index: {}]   ;;  %s808_s4 = inlined_call_operand.vmem [shape: f32[1,128], index: 4, kind: input, shape index: {}]   ;;  %s809_s5 = inlined_call_operand.vmem [shape: f32[1,128], index: 5, kind: input, shape index: {}]   ;;  %s810_s6 = inlined_call_operand.vmem [shape: f32[1,128], index: 6, kind: input, shape index: {}]   ;;  %s811_s7 = inlined_call_operand.hbm [shape: f32[16,128], index: 7, kind: output, shape index: {}]  }
   0x1   :  { %13 = vsyncpa [#allocation6], 0 }
   0x2   :  { %14 = vsyncpa [#allocation4], 0  ;;  %s686_s24 = smov [#allocation5]   ;;  %s592_s28 = scalar_lea.hbm %s805_s1, 2048 }
   0x3   :  { %s32_s25 = sshll.u32 %s686_s24, 4  ;;  %p593_p0 = scmp.ne.s32.totalorder %s805_s1, %s592_s28  ;;  %s33_s25 = int_to_ptr.vmem [resolvable:$true] %s32_s25 }
   0x4   :  { %p596_p1 = scmp.lt.u32.totalorder %s592_s28, %s805_s1 }
   0x6   :  { %p598_p2 = pnand %p596_p1, %p593_p0 }
   0x8   :  { %601 = shalt.err (!%p598_p2)
}
   0x9   :  { %s602_s10 = scalar_lea.vmem %s33_s25, 2048  ;;  %p607_p4 = scmp.lt.s32.totalorder %s33_s25, %s33_s25 }
   0xa   :  { %p603_p3 = scmp.ne.s32.totalorder %s33_s25, %s602_s10  ;;  %p608_p5 = scmp.lt.s32.totalorder %s602_s10, %s602_s10 }
   0xc   :  { %p609_p6 = por %p608_p5, %p607_p4 }
   0xe   :  { %p610_p7 = pnand %p609_p6, %p603_p3 }
  0x10   :  { %613 = shalt.err (!%p610_p7)
}
  0x11   :  { %s687_s11 = smov 64   ;;  %s688_s12 = smov 4  }
  0x12   :  { %38 = dma.hbm_to_vmem [thread:$0]  %s805_s1, 2048, %s33_s25, [#allocation6], %s687_s11, %s687_s11, %s688_s12  }
  0x13   :  { %s689_s15 = smov [#allocation2]   ;;  %s614_s19 = scalar_lea.hbm %s804_s0, 256 }
  0x14   :  { %s20_s16 = sshll.u32 %s689_s15, 4  ;;  %p615_p8 = scmp.ne.s32.totalorder %s804_s0, %s614_s19  ;;  %s21_s16 = int_to_ptr.vmem [resolvable:$true] %s20_s16 }
  0x15   :  { %p618_p9 = scmp.lt.u32.totalorder %s614_s19, %s804_s0 }
  0x17   :  { %p620_p10 = pnand %p618_p9, %p615_p8 }
  0x19   :  { %623 = shalt.err (!%p620_p10)
}
  0x1a   :  { %s624_s24 = scalar_lea.vmem %s21_s16, 256  ;;  %p629_p12 = scmp.lt.s32.totalorder %s21_s16, %s21_s16 }
  0x1b   :  { %p625_p11 = scmp.ne.s32.totalorder %s21_s16, %s624_s24  ;;  %p630_p13 = scmp.lt.s32.totalorder %s624_s24, %s624_s24 }
  0x1d   :  { %p631_p0 = por %p630_p13, %p629_p12 }
  0x1f   :  { %p632_p1 = pnand %p631_p0, %p625_p11 }
  0x21   :  { %635 = shalt.err (!%p632_p1)
}
  0x22   :  { %s690_s1 = smov 128   ;;  %s691_s25 = smov 8  }
  0x23   :  { %26 = dma.hbm_to_vmem [thread:$0]  %s804_s0, 256, %s21_s16, [#allocation3], %s690_s1, %s690_s1, %s691_s25  }
  0x24   :  { %s692_s28 = smov [#allocation7]   ;;  %s636_s9 = scalar_lea.hbm %s807_s3, 2048 }
  0x25   :  { %s46_s29 = sshll.u32 %s692_s28, 4  ;;  %p637_p2 = scmp.ne.s32.totalorder %s807_s3, %s636_s9  ;;  %s47_s29 = int_to_ptr.vmem [resolvable:$true] %s46_s29 }
  0x26   :  { %p640_p3 = scmp.lt.u32.totalorder %s636_s9, %s807_s3 }
  0x28   :  { %p642_p4 = pnand %p640_p3, %p637_p2 }
  0x2a   :  { %645 = shalt.err (!%p642_p4)
}
  0x2b   :  { %s646_s14 = scalar_lea.vmem %s47_s29, 2048  ;;  %p651_p6 = scmp.lt.s32.totalorder %s47_s29, %s47_s29 }
  0x2c   :  { %p647_p5 = scmp.ne.s32.totalorder %s47_s29, %s646_s14  ;;  %p652_p7 = scmp.lt.s32.totalorder %s646_s14, %s646_s14 }
  0x2e   :  { %p653_p8 = por %p652_p7, %p651_p6 }
  0x30   :  { %p654_p9 = pnand %p653_p8, %p647_p5 }
  0x32   :  { %657 = shalt.err (!%p654_p9)
}
  0x33   :  { %52 = dma.hbm_to_vmem [thread:$0]  %s807_s3, 2048, %s47_s29, [#allocation6], %s690_s1, %s690_s1, %s691_s25  }
  0x34   :  { %680 = dma.done.wait [#allocation3], 256  }
  0x35   :  { %681 = vsyncadd [#allocation3], 4294967040 }
  0x36   :  { %682 = dma.done.wait [#allocation6], 4096  }
  0x37   :  { %683 = vsyncadd [#allocation6], 4294963200  ;;  %v565_v0 = vld [vmem:[#allocation5 + $0x40] sm:$0xff]   ;;  %v567_v2 = vld [vmem:[#allocation5 + $0x48] sm:$0xff]   ;;  %v693_v63 = vmov 0  }
  0x38   :  { %v566_v1 = vld [vmem:[#allocation5] sm:$0xff]   ;;  %447 = vmatprep.subr.bf16.mxu0 %v565_v0  ;;  %v568_v3 = vld [vmem:[#allocation5 + $0x8] sm:$0xff]   ;;  %v569_v4 = vld [vmem:[#allocation5 + $0x50] sm:$0xff]   ;;  %563 = vset.pattern.permute.xlu1 %v693_v63 }
  0x39   :  { %448 = vmatpush3.bf16.msra.mxu0 %v566_v1  ;;  %v570_v5 = vld [vmem:[#allocation5 + $0x10] sm:$0xff]   ;;  %v571_v6 = vld [vmem:[#allocation5 + $0x58] sm:$0xff]   ;;  %v573_v8 = vld [vmem:[#allocation5 + $0x60] sm:$0xff]   ;;  %564 = vset.pattern.permute.xlu0 %v693_v63 }
  0x3a   :  { %449 = vmatprep.subr.bf16.mxu0 %v567_v2  ;;  %v572_v7 = vld [vmem:[#allocation5 + $0x18] sm:$0xff]   ;;  %v574_v9 = vld [vmem:[#allocation5 + $0x20] sm:$0xff]   ;;  %v575_v10 = vld [vmem:[#allocation5 + $0x68] sm:$0xff]  }
  0x3b   :  { %v583_v11 = vld [vmem:[#allocation2 + $0x4] ss:$8 sps:$4 sm:$0xff]   ;;  %v259_v12 = vld [vmem:[#allocation7] sm:$0xff]  ;;  %v260_v13 = vld [vmem:[#allocation7 + $0x8] sm:$0xff] }
  0x3c   :  { %v522_v14 = vpack.c.bf16 %v260_v13, %v259_v12  ;;  %v261_v15 = vld [vmem:[#allocation7 + $0x10] sm:$0xff]  ;;  %v262_v16 = vld [vmem:[#allocation7 + $0x18] sm:$0xff]  ;;  %v576_v17 = vld [vmem:[#allocation5 + $0x28] sm:$0xff]   ;;  %248 = vmatprep.mubr.bf16.mxu0 %v583_v11 }
  0x3d   :  { %450 = vmatpush3.bf16.msra.mxu0 %v568_v3  ;;  %v526_v18 = vpack.c.bf16 %v262_v16, %v261_v15  ;;  %v263_v19 = vld [vmem:[#allocation7 + $0x20] sm:$0xff]  ;;  %v264_v20 = vld [vmem:[#allocation7 + $0x28] sm:$0xff]  ;;  %v577_v21 = vld [vmem:[#allocation5 + $0x70] sm:$0xff]  }
  0x3e   :  { %451 = vmatprep.subr.bf16.mxu0 %v569_v4  ;;  %523 = vmatprep.subr.bf16.mxu1 %v522_v14  ;;  %v530_v22 = vpack.c.bf16 %v264_v20, %v263_v19  ;;  %v578_v23 = vld [vmem:[#allocation5 + $0x30] sm:$0xff]   ;;  %v266_v25 = vld [vmem:[#allocation7 + $0x38] sm:$0xff]  ;;  %v267_v29 = vld [vmem:[#allocation7 + $0x40] sm:$0xff] }
  0x3f   :  { %525 = vmatpush3.bf16.msra.mxu1 %v522_v14  ;;  %v265_v24 = vld [vmem:[#allocation7 + $0x30] sm:$0xff]  ;;  %v579_v26 = vld [vmem:[#allocation5 + $0x78] sm:$0xff]   ;;  %v268_v30 = vld [vmem:[#allocation7 + $0x48] sm:$0xff] }
  0x40   :  { %527 = vmatprep.subr.bf16.mxu1 %v526_v18  ;;  %v534_v27 = vpack.c.bf16 %v266_v25, %v265_v24  ;;  %v580_v28 = vld [vmem:[#allocation5 + $0x38] sm:$0xff]   ;;  %v538_v32 = vpack.c.bf16 %v268_v30, %v267_v29  ;;  %v269_v33 = vld [vmem:[#allocation7 + $0x50] sm:$0xff]  ;;  %v271_v36 = vld [vmem:[#allocation7 + $0x60] sm:$0xff] }
  0x41   :  { %452 = vmatpush3.bf16.msra.mxu0 %v570_v5  ;;  %v581_v31 = vld [vmem:[#allocation2] ss:$8 sps:$4 sm:$0xff]   ;;  %v272_v37 = vld [vmem:[#allocation7 + $0x68] sm:$0xff] }
  0x42   :  { %453 = vmatprep.subr.bf16.mxu0 %v571_v6  ;;  %v270_v34 = vld [vmem:[#allocation7 + $0x58] sm:$0xff]  ;;  %v546_v38 = vpack.c.bf16 %v272_v37, %v271_v36  ;;  %v273_v39 = vld [vmem:[#allocation7 + $0x70] sm:$0xff] }
  0x43   :  { %529 = vmatpush3.bf16.msra.mxu1 %v526_v18  ;;  %v542_v35 = vpack.c.bf16 %v270_v34, %v269_v33  ;;  %v274_v40 = vld [vmem:[#allocation7 + $0x78] sm:$0xff]  ;;  %v423_v44 = vld [vmem:[%s806_s2] ss:$0 sm:$0xff] }
  0x44   :  { %531 = vmatprep.subr.bf16.mxu1 %v530_v22  ;;  %v550_v41 = vpack.c.bf16 %v274_v40, %v273_v39  ;;  %v442_v53 = vld [vmem:[%s808_s4] ss:$0 sm:$0xff]  ;;  %s694_s4 = smov [#allocation8]  }
  0x45   :  { %454 = vmatpush3.bf16.msra.mxu0 %v572_v7  ;;  %v443_v58 = vld [vmem:[%s809_s5] ss:$0 sm:$0xff]  ;;  %s410_s5 = sshll.u32 %s694_s4, 4  ;;  %s411_s5 = int_to_ptr.vmem [resolvable:$true] %s410_s5 }
  0x46   :  { %455 = vmatprep.subr.bf16.mxu0 %v573_v8  ;;  %v444_v0 = vld [vmem:[%s810_s6] ss:$0 sm:$0xff]  ;;  %s658_s6 = scalar_lea.vmem %s411_s5, 256  ;;  %p663_p11 = scmp.lt.s32.totalorder %s411_s5, %s411_s5 }
  0x47   :  { %533 = vmatpush3.bf16.msra.mxu1 %v530_v22  ;;  %p659_p10 = scmp.ne.s32.totalorder %s411_s5, %s658_s6  ;;  %p664_p12 = scmp.lt.s32.totalorder %s658_s6, %s658_s6 }
  0x48   :  { %535 = vmatprep.subr.bf16.mxu1 %v534_v27 }
  0x49   :  { %456 = vmatpush3.bf16.msra.mxu0 %v574_v9  ;;  %p665_p13 = por %p664_p12, %p663_p11 }
  0x4a   :  { %457 = vmatprep.subr.bf16.mxu0 %v575_v10 }
  0x4b   :  { %537 = vmatpush3.bf16.msra.mxu1 %v534_v27  ;;  %p666_p0 = pnand %p665_p13, %p659_p10 }
  0x4c   :  { %539 = vmatprep.subr.bf16.mxu1 %v538_v32 }
  0x4d   :  { %458 = vmatpush3.bf16.msra.mxu0 %v576_v17 }
  0x4e   :  { %459 = vmatprep.subr.bf16.mxu0 %v577_v21 }
  0x4f   :  { %541 = vmatpush3.bf16.msra.mxu1 %v538_v32 }
  0x50   :  { %543 = vmatprep.subr.bf16.mxu1 %v542_v35 }
  0x51   :  { %460 = vmatpush3.bf16.msra.mxu0 %v578_v23 }
  0x52   :  { %461 = vmatprep.subr.bf16.mxu0 %v579_v26 }
  0x53   :  { %545 = vmatpush3.bf16.msra.mxu1 %v542_v35 }
  0x54   :  { %547 = vmatprep.subr.bf16.mxu1 %v546_v38 }
  0x55   :  { %462 = vmatpush3.bf16.msra.mxu0 %v580_v28 }
  0x57   :  { %549 = vmatpush3.bf16.msra.mxu1 %v546_v38 }
  0x58   :  { %249 = vmatmul.mubr.bf16.vlgmr.msra.gmra.mrb[0].mxu0 %v581_v31  ;;  %551 = vmatprep.subr.bf16.mxu1 %v550_v41 }
  0x5b   :  { %553 = vmatpush3.bf16.msra.mxu1 %v550_v41 }
 0x12b   :  { %v463_v42 = vpop.f32.mrb[0].mxu0 }
 0x12c   :  { %v464_v43 = vpop.f32.mrb[1].mxu0 }
 0x12d   :  { %v465_v45 = vadd.f32 %v464_v43, %v463_v42  ;;  %v466_v46 = vpop.f32.mrb[2].mxu0 }
 0x12e   :  { %v467_v47 = vpop.f32.mrb[3].mxu0 }
 0x12f   :  { %v468_v48 = vadd.f32 %v467_v47, %v466_v46  ;;  %v251_v49 = vadd.f32 %v465_v45, %v423_v44 }
 0x131   :  { %v254_v50 = vadd.f32 %v468_v48, %v423_v44  ;;  %v257_v51 = vmax.f32 %v251_v49, 0.0 }
 0x133   :  { %v258_v52 = vmax.f32 %v254_v50, 0.0  ;;  %519 = vmatprep.mubr.f32.mxu1 %v257_v51 }
 0x135   :  { %520 = vmatmul.mubr.f32.vlgmr.msra.gmra.mrb[0].mxu1 %v258_v52 }
 0x208   :  { %v521_v54 = vpop.f32.mrb[0].mxu1 }
 0x209   :  { %v348_v55 = vpop.f32.mrb[1].mxu1  ;;  %v354_v56 = vadd.f32 %v521_v54, %v442_v53 }
 0x20a   :  { %v349_v57 = vadd.f32 %v442_v53, %v348_v55 }
 0x20b   :  { %v358_v60 = vmax.f32 %v354_v56, 0.0 }
 0x20c   :  { %v357_v59 = vmax.f32 %v349_v57, 0.0 }
 0x20d   :  { %v367_v62 = vmul.f32 %v443_v58, %v358_v60 }
 0x20e   :  { %v366_v61 = vmul.f32 %v443_v58, %v357_v59 }
 0x210   :  { %368 = vadd.xlane.f32.xlu0 %v366_v61 }
 0x214   :  { %370 = vadd.xlane.f32.xlu0 %v367_v62 }
 0x29d   :  { %v369_v1 = vpop.xlane.xlu0 %368 }
 0x29e   :  { %v379_v2 = vadd.f32 %v444_v0, %v369_v1 }
 0x2a0   :  { %v445_v3 = vmul.f32 -1.442695, %v379_v2 }
 0x2a1   :  { %v371_v4 = vpop.xlane.xlu0 %370 }
 0x2a2   :  { %584 = vpow2.f32 %v445_v3  ;;  %v380_v5 = vadd.f32 %v444_v0, %v371_v4 }
 0x2a4   :  { %v446_v6 = vmul.f32 -1.442695, %v380_v5 }
 0x2a6   :  { %586 = vpow2.f32 %v446_v6 }
 0x2ac   :  { %v585_v7 = vpop.eup %584 }
 0x2ad   :  { %v387_v8 = vadd.f32 1.0, %v585_v7 }
 0x2af   :  { %588 = vrcp.f32 %v387_v8 }
 0x2b0   :  { %v587_v9 = vpop.eup %586 }
 0x2b1   :  { %v388_v10 = vadd.f32 1.0, %v587_v9 }
 0x2b3   :  { %590 = vrcp.f32 %v388_v10 }
 0x2b9   :  { %v589_v11 = vpop.eup %588 }
 0x2ba   :  { %395 = vperm.xlu1 %563, %v589_v11  }
 0x2bd   :  { %v591_v12 = vpop.eup %590 }
 0x2be   :  { %400 = vperm.xlu1 %563, %v591_v12  }
 0x339   :  { %v396_v13 = vpop.permute.xlu1 %395 }
 0x33a   :  { %403 = vst [vmem:[#allocation8] sm:$0xff] %v396_v13 }
 0x33d   :  { %v401_v14 = vpop.permute.xlu1 %400 }
 0x33e   :  { %404 = vst [vmem:[#allocation8 + $0x8] sm:$0xff] %v401_v14 }
 0x33f   :  { %669 = shalt.err (!%p666_p0)
}
 0x340   :  { %s670_s24 = scalar_lea.hbm %s811_s7, 256 }
 0x341   :  { %p671_p1 = scmp.ne.s32.totalorder %s811_s7, %s670_s24  ;;  %p674_p2 = scmp.lt.u32.totalorder %s670_s24, %s811_s7 }
 0x343   :  { %p676_p3 = pnand %p674_p2, %p671_p1 }
 0x345   :  { %679 = shalt.err (!%p676_p3)
}
 0x346   :  { %416 = dma.vmem_to_hbm [thread:$0]  %s411_s5, 256, %s811_s7, [#allocation4], %s690_s1, %s690_s1, %s691_s25  }
 0x347   :  { %684 = dma.done.wait [#allocation4], 256  }
 0x348   :  { %685 = vsyncadd [#allocation4], 4294967040 }
 0x349   :  { %420 = vsyncpa [#allocation3], 1 }
 0x34a   :  { %421 = vsyncpa [#allocation6], 1 }
 0x34b   :  { %422 = vsyncpa [#allocation4], 1 }

</bundles_post_ra>
